<compile_context>
chip_gen: v7x
topology: tpu7x:2x2x1
jax: 0.10.0
libtpu: 0.0.40
codegen_flags: <defaults>
</compile_context>

<pallas_src>
import math
from functools import partial

import jax
import jax.numpy as jnp
from jax import lax
from jax.experimental import pallas as pl
from jax.experimental.pallas import tpu as pltpu

_LANES = 128

# Abramowitz & Stegun 7.1.26 erf approximation (max abs error ~1.5e-7):
#   erf(|z|) ~= 1 - (a1*t + a2*t^2 + a3*t^3 + a4*t^4 + a5*t^5) * exp(-z^2),
#   t = 1 / (1 + p*|z|)
_ERF_P = 0.3275911
_ERF_A1 = 0.254829592
_ERF_A2 = -0.284496736
_ERF_A3 = 1.421413741
_ERF_A4 = -1.453152027
_ERF_A5 = 1.061405429


def _sigma_gelu_kernel(x_ref, o_ref, *, sigma: float, fused_erf: bool):
    xf = x_ref[...].astype(jnp.float32)          # f32 compute for erf/exp accuracy
    z = xf * jnp.float32(1.0 / sigma)
    coef = jnp.float32(sigma / (2.0 * math.sqrt(math.pi)))
    e = jnp.exp(-(z * z))                        # EUP; needed by the formula anyway

    if fused_erf:
        # Share exp(-z^2) between erf and the trailing term; the division also
        # lands on the EUP, keeping the VPU polynomial short (v6e/v7x are
        # VALU-bound for this kernel; v5e stays mem-bound either way).
        az = jnp.abs(z)
        t = jnp.float32(1.0) / (jnp.float32(_ERF_P) * az + jnp.float32(1.0))
        poly = t * (jnp.float32(_ERF_A1) + t * (jnp.float32(_ERF_A2) + t * (
            jnp.float32(_ERF_A3) + t * (jnp.float32(_ERF_A4) + t * jnp.float32(_ERF_A5)))))
        erf_abs = jnp.float32(1.0) - poly * e
        erf_z = jnp.where(z < 0, -erf_abs, erf_abs)
    else:
        erf_z = lax.erf(z)

    # 0.5*x*erf(z) + 0.5*x + coef*exp(-z^2)  ==  0.5*x*(erf(z)+1) + coef*exp(-z^2)
    y = jnp.float32(0.5) * xf * (erf_z + jnp.float32(1.0)) + coef * e
    o_ref[...] = y.astype(o_ref.dtype)


def _sigma_gelu_jnp(x: jax.Array, sigma: float) -> jax.Array:
    """Plain-JAX fallback for tiny inputs / the <=127-element ragged tail."""
    xf = x.astype(jnp.float32)
    z = xf * (1.0 / sigma)
    y = 0.5 * xf * (lax.erf(z) + 1.0) + (sigma / (2.0 * math.sqrt(math.pi))) * jnp.exp(-z * z)
    return y.astype(x.dtype)


def _round_up(n: int, m: int) -> int:
    return ((n + m - 1) // m) * m


def _vmem_capacity_bytes() -> int:
    try:
        return int(pltpu.get_tpu_info().vmem_capacity_bytes)
    except Exception:
        return 64 * 1024 * 1024  # conservative fallback (v7x per-TensorCore)


def _run_slab(x2d: jax.Array, sigma: float, block_rows, fused_erf: bool) -> jax.Array:
    rows, lanes = x2d.shape
    assert lanes == _LANES
    itemsize = jnp.dtype(x2d.dtype).itemsize
    vmem_cap = _vmem_capacity_bytes()

    if block_rows is None:
        # ~2-4 MiB blocks hit the measured HBM roofline plateau; bigger blocks
        # only reduce the step count (worse pipelining / core split).
        block_bytes = max(1 << 20, min(4 << 20, vmem_cap // 32))
        block_rows = max(8, (block_bytes // (_LANES * itemsize)) // 8 * 8)

    if rows < 8:
        # Tiny slab: single block equal to the full array (allowed: block dim
        # equals the array dim, so the (8,128) divisibility rule is waived).
        tile_rows = rows
        grid = (1,)
    else:
        # Target >= 8 grid steps so each v7x TensorCore gets >= 4 double-buffered
        # steps; cap the tile at the VMEM budget for big inputs.
        desired_steps = 8 if rows >= 64 else max(1, pl.cdiv(rows, 8))
        tile_rows = max(8, _round_up(pl.cdiv(rows, desired_steps), 8))
        tile_rows = min(tile_rows, block_rows)
        tile_rows = max(8, (tile_rows // 8) * 8)
        steps = pl.cdiv(rows, tile_rows)
        # Prefer an even step count (balanced megacore split) when rows permit.
        if steps > 1 and steps % 2 == 1:
            alt = max(8, _round_up(pl.cdiv(rows, steps + 1), 8))
            if pl.cdiv(rows, alt) % 2 == 0:
                tile_rows = alt
                steps = pl.cdiv(rows, alt)
        grid = (steps,)

    tile_bytes = tile_rows * _LANES * itemsize
    # 4 live block buffers (in + out, double-buffered) plus slack for Mosaic's
    # internal scratch; deliberately small so v7x's 64 MiB VMEM keeps headroom.
    vmem_limit = min(vmem_cap // 2, max(16 << 20, 4 * tile_bytes + (4 << 20)))

    n_elems = rows * _LANES
    cost = pl.CostEstimate(
        flops=22 * n_elems,                 # erf polynomial + combine, per element
        transcendentals=2 * n_elems,        # exp + reciprocal (division) per element
        bytes_accessed=2 * n_elems * itemsize,
    )

    return pl.pallas_call(
        partial(_sigma_gelu_kernel, sigma=float(sigma), fused_erf=fused_erf),
        out_shape=jax.ShapeDtypeStruct((rows, _LANES), x2d.dtype),
        grid_spec=pltpu.PrefetchScalarGridSpec(
            num_scalar_prefetch=0,
            grid=grid,
            # Default pipeline depth (2). If xprof shows exposed input DMA with
            # the smaller blocks, switch to pipeline_mode=pl.Buffered(3) here.
            in_specs=[pl.BlockSpec((tile_rows, _LANES), lambda i: (i, 0))],
            out_specs=pl.BlockSpec((tile_rows, _LANES), lambda i: (i, 0)),
        ),
        compiler_params=pltpu.CompilerParams(
            dimension_semantics=("parallel",),
            vmem_limit_bytes=int(vmem_limit),
        ),
        cost_estimate=cost,
    )(x2d)


def sigma_gelu(x: jax.Array, sigma: float = 1.0, *, block_rows: int = None,
               fused_erf: bool = True) -> jax.Array:
    """Elementwise SigmaGeLU. `x` may have any shape; dtype is preserved."""
    orig_shape = x.shape
    orig_dtype = x.dtype
    total = x.size
    if total == 0:
        return x

    main = (total // _LANES) * _LANES
    tail = total - main

    if main == 0:
        # Fewer than 128 elements: a kernel launch costs more than the math.
        return _sigma_gelu_jnp(x, sigma)

    if tail == 0:
        # Common case (e.g. conv activations): pure reshape, no pad / no slice.
        x2d = x.reshape(main // _LANES, _LANES)
        return _run_slab(x2d, sigma, block_rows, fused_erf).reshape(orig_shape)

    # Ragged: run the kernel on the 128-aligned prefix and compute the <=127
    # element tail in plain JAX, stitching with a single concat (avoids the
    # pad + slice pair, which would cost two extra full HBM passes).
    x_flat = x.reshape(-1)
    head2d = x_flat[:main].reshape(main // _LANES, _LANES)
    head_y = _run_slab(head2d, sigma, block_rows, fused_erf).reshape(-1)
    tail_y = _sigma_gelu_jnp(x_flat[main:], sigma)
    return jnp.concatenate([head_y, tail_y]).reshape(orig_shape).astype(orig_dtype)


def sigma_gelu_ref(x: jax.Array, sigma: float = 1.0) -> jax.Array:
    xf = x.astype(jnp.float32)
    z = xf / sigma
    y = 0.5 * xf * lax.erf(z) + 0.5 * xf + (sigma / (2.0 * math.sqrt(math.pi))) * jnp.exp(-z * z)
    return y.astype(x.dtype)


if __name__ == "__main__":
    key = jax.random.PRNGKey(0)
    sigma = 1.0  # module default

    # Small NCHW input consistent with a conv-net activation: [N=2, C=4, H=16, W=16].
    x = jax.random.normal(key, (2, 4, 16, 16), dtype=jnp.float32)
    y = sigma_gelu(x, sigma=sigma)
    jax.block_until_ready(y)
    y_ref = sigma_gelu_ref(x, sigma=sigma)
    assert y.shape == x.shape and y.dtype == x.dtype
    assert jnp.max(jnp.abs(y - y_ref)) < 1e-5, "mismatch vs reference (aligned case)"

    # Ragged case: 3*5*9 = 135 elements exercises the aligned-prefix kernel path
    # plus the plain-JAX tail stitch.
    x2 = jax.random.normal(jax.random.PRNGKey(1), (3, 5, 9), dtype=jnp.float32)
    y2 = sigma_gelu(x2, sigma=sigma)
    jax.block_until_ready(y2)
    y2_ref = sigma_gelu_ref(x2, sigma=sigma)
    assert y2.shape == x2.shape and y2.dtype == x2.dtype
    assert jnp.max(jnp.abs(y2 - y2_ref)) < 1e-5, "mismatch vs reference (ragged case)"

    print("KERNEL_OK")
</pallas_src>

<mosaic_0001>
module attributes {stable_mosaic.version = 11 : i64} {
  func.func @_sigma_gelu_kernel(%arg0: i32, %arg1: memref<8x128xf32, #tpu.memory_space<vmem>>, %arg2: memref<8x128xf32, #tpu.memory_space<vmem>>) attributes {dimension_semantics = [#tpu.dimension_semantics<parallel>], iteration_bounds = array<i64: 2>, scalar_prefetch = 0 : i64, scratch_operands = 0 : i64, tpu.core_type = #tpu.core_type<tc>, window_params = [{transform_indices = @transform_0, window_bounds = array<i64: 8, 128>}, {transform_indices = @transform_1, window_bounds = array<i64: 8, 128>}]} {
    %c0 = arith.constant 0 : index
    %c0_0 = arith.constant 0 : index
    %0 = vector.load %arg1[%c0, %c0_0] : memref<8x128xf32, #tpu.memory_space<vmem>>, vector<8x128xf32>
    %cst = arith.constant 1.000000e+00 : f32
    %1 = vector.broadcast %cst : f32 to vector<8x128xf32>
    %2 = arith.mulf %0, %1 : vector<8x128xf32>
    %3 = arith.mulf %2, %2 : vector<8x128xf32>
    %cst_1 = arith.constant 0.000000e+00 : f32
    %4 = vector.broadcast %cst_1 : f32 to vector<8x128xf32>
    %5 = arith.subf %4, %3 : vector<8x128xf32>
    %6 = math.exp %5 : vector<8x128xf32>
    %7 = math.absf %2 : vector<8x128xf32>
    %cst_2 = arith.constant 0.327591091 : f32
    %8 = vector.broadcast %cst_2 : f32 to vector<8x128xf32>
    %9 = arith.mulf %8, %7 : vector<8x128xf32>
    %cst_3 = arith.constant 1.000000e+00 : f32
    %10 = vector.broadcast %cst_3 : f32 to vector<8x128xf32>
    %11 = arith.addf %9, %10 : vector<8x128xf32>
    %cst_4 = arith.constant 1.000000e+00 : f32
    %12 = vector.broadcast %cst_4 : f32 to vector<8x128xf32>
    %13 = arith.divf %12, %11 : vector<8x128xf32>
    %cst_5 = arith.constant 1.06140542 : f32
    %14 = vector.broadcast %cst_5 : f32 to vector<8x128xf32>
    %15 = arith.mulf %13, %14 : vector<8x128xf32>
    %cst_6 = arith.constant -1.45315206 : f32
    %16 = vector.broadcast %cst_6 : f32 to vector<8x128xf32>
    %17 = arith.addf %16, %15 : vector<8x128xf32>
    %18 = arith.mulf %13, %17 : vector<8x128xf32>
    %cst_7 = arith.constant 1.42141378 : f32
    %19 = vector.broadcast %cst_7 : f32 to vector<8x128xf32>
    %20 = arith.addf %19, %18 : vector<8x128xf32>
    %21 = arith.mulf %13, %20 : vector<8x128xf32>
    %cst_8 = arith.constant -0.284496725 : f32
    %22 = vector.broadcast %cst_8 : f32 to vector<8x128xf32>
    %23 = arith.addf %22, %21 : vector<8x128xf32>
    %24 = arith.mulf %13, %23 : vector<8x128xf32>
    %cst_9 = arith.constant 0.254829586 : f32
    %25 = vector.broadcast %cst_9 : f32 to vector<8x128xf32>
    %26 = arith.addf %25, %24 : vector<8x128xf32>
    %27 = arith.mulf %13, %26 : vector<8x128xf32>
    %28 = arith.mulf %27, %6 : vector<8x128xf32>
    %cst_10 = arith.constant 1.000000e+00 : f32
    %29 = vector.broadcast %cst_10 : f32 to vector<8x128xf32>
    %30 = arith.subf %29, %28 : vector<8x128xf32>
    %cst_11 = arith.constant 0.000000e+00 : f32
    %31 = vector.broadcast %cst_11 : f32 to vector<8x128xf32>
    %32 = arith.cmpf olt, %2, %31 : vector<8x128xf32>
    %cst_12 = arith.constant 0.000000e+00 : f32
    %33 = vector.broadcast %cst_12 : f32 to vector<8x128xf32>
    %34 = arith.subf %33, %30 : vector<8x128xf32>
    %35 = arith.select %32, %34, %30 : vector<8x128xi1>, vector<8x128xf32>
    %cst_13 = arith.constant 5.000000e-01 : f32
    %36 = vector.broadcast %cst_13 : f32 to vector<8x128xf32>
    %37 = arith.mulf %36, %0 : vector<8x128xf32>
    %cst_14 = arith.constant 1.000000e+00 : f32
    %38 = vector.broadcast %cst_14 : f32 to vector<8x128xf32>
    %39 = arith.addf %35, %38 : vector<8x128xf32>
    %40 = arith.mulf %37, %39 : vector<8x128xf32>
    %cst_15 = arith.constant 0.282094806 : f32
    %41 = vector.broadcast %cst_15 : f32 to vector<8x128xf32>
    %42 = arith.mulf %41, %6 : vector<8x128xf32>
    %43 = arith.addf %40, %42 : vector<8x128xf32>
    %c0_16 = arith.constant 0 : index
    %c0_17 = arith.constant 0 : index
    %44 = vector.load %arg2[%c0_16, %c0_17] : memref<8x128xf32, #tpu.memory_space<vmem>>, vector<8x128xf32>
    tpu.vector_store %arg2[%c0_16, %c0_17], %43 {strides = array<i32>} : memref<8x128xf32, #tpu.memory_space<vmem>>, vector<8x128xf32>,
    return
  }
  func.func @transform_0(%arg0: i32) -> (i32, i32) {
    %c0_i32 = arith.constant 0 : i32
    %c0_i32_0 = arith.constant 0 : i32
    return %arg0, %c0_i32 : i32, i32
  }
  func.func @transform_1(%arg0: i32) -> (i32, i32) {
    %c0_i32 = arith.constant 0 : i32
    %c0_i32_0 = arith.constant 0 : i32
    return %arg0, %c0_i32 : i32, i32
  }
}

</mosaic_0001>

<bundles_post_ra>
// kernel: tpu_custom_call.1
= control target key start
LH: loop header
LB: loop body
LE: loop exit
PB: predicated region body
PF: predicated region fallthrough
CT: control target
= control target key end

     0   :  { %6 = vsyncpa [#allocation3], 0  ;;  %s583_s0 = inlined_call_operand.hbm [shape: f32[16,128], index: 0, kind: input, shape index: {}]   ;;  %s584_s1 = inlined_call_operand.hbm [shape: f32[16,128], index: 1, kind: output, shape index: {}]  }
   0x1   :  { %8 = vsyncpa [#allocation3 + $0x1], 0 }
   0x2   :  { %9 = vsyncpa [#allocation4], 0 }
   0x3   :  { %11 = vsyncpa [#allocation4 + $0x1], 0  ;;  %s418_s6 = smov 0   ;;  %s420_s7 = smov 0  }
   0x4   :  { %s422_s8 = smov 0   ;;  %s424_s9 = smov 0  }
   0x5 LB: > { %s439_s10 = sadd.s32 4294967295, %s404_s9   ;;  %s246_s11 = sadd.s32 4294967294, %s404_s9   ;;  %s404_s9 = sphi %s424_s9, %s599_s9   ;;  %s400_s8 = sphi %s422_s8, %s598_s8   ;;  %s396_s7 = sphi %s420_s7, %s597_s7   ;;  %s392_s6 = sphi %s418_s6, %s596_s6  }
   0x6   : > { %s443_s12 = sadd.s32 1, %s404_s9   ;;  %s24_s13 = sadd.s32 1, %s400_s8 }
   0x7   : > { %s21_s14 = ssub.s32 %s404_s9, %s443_s12  ;;  %p31_p0 = scmp.ne.s32.totalorder %s400_s8, %s396_s7 }
   0x8   : > { %p22_p1 = scmp.eq.s32.totalorder %s21_s14, 0  ;;  %p32_p2 = scmp.eq.s32.totalorder %s404_s9, 0 }
   0x9   : > { %p37_p3 = scmp.ne.s32.totalorder %s396_s7, %s392_s6  ;;  %p38_p4 = scmp.eq.s32.totalorder %s439_s10, 0 }
   0xa   : > { %s455_s15 = scalar_select %p22_p1, %s400_s8, %s24_s13  }
   0xb   : > { %p457_p5 = por %p32_p2, %p31_p0  ;;  %p461_p6 = por %p38_p4, %p37_p3 }
   0xc   : > { %p61_p7 = scmp.eq.s32.totalorder %s439_s10, 1  ;;  %p67_p8 = scmp.eq.s32.totalorder %s246_s11, 1 }
   0xd   : > { %p270_p10 = scmp.lt.s32.totalorder %s404_s9, 2  ;;  %s87_s20 = sand.u32 1, %s400_s8  }
   0xe   : > { %p468_p11 = por %p61_p7, %p31_p0  ;;  %p472_p12 = por %p67_p8, %p37_p3 }
   0xf   : > { %s250_s21 = sshll.u32 %s404_s9, 7  ;;  %s249_s22 = sshll.u32 %s87_s20, 3 }
  0x10   : > { %s588_s18 = scalar_select %p468_p11, 1, 0 }
  0x11   : > { %s589_s19 = scalar_select %p472_p12, 1, 0 }
  0x12   : > { %s481_s25 = scalar_lea.hbm %s583_s0, %s250_s21  ;;  %s91_s26 = scalar_lea.vmem [#allocation2], %s249_s22 }
  0x13   : > { %s98_s27 = sshll.u32 %s91_s26, 4  ;;  %p485_p13 = pnand %p270_p10, %p457_p5  ;;  %s489_s27 = int_to_ptr.vmem [resolvable:$true] %s98_s27 }
  0x14   : > { %s88_s29 = scalar_lea.sflag [#allocation3], %s87_s20  ;;  %s308_s30 = scalar_lea.hbm %s481_s25, 128 }
  0x15   : > { %p309_p2 = scmp.ne.s32.totalorder %s481_s25, %s308_s30  ;;  %p310_p3 = pneg %p485_p13 }
  0x16   : > { %s313_s4 = scalar_lea.hbm %s583_s0, 256  ;;  %p314_p5 = scmp.lt.u32.totalorder %s481_s25, %s583_s0 }
  0x17   : > { %p311_p4 = pnand %p310_p3, %p309_p2  ;;  %p315_p8 = scmp.lt.u32.totalorder %s313_s4, %s308_s30 }
  0x18   : > { %p317_p9 = scmp.lt.u32.totalorder %s308_s30, %s481_s25 }
  0x19   : > { %p312_p7 = pneg %p311_p4  ;;  %p316_p10 = por %p315_p8, %p314_p5 }
  0x1b   : > { %p318_p0 = por %p317_p9, %p316_p10 }
  0x1d   : > { %p319_p1 = pnand %p318_p0, %p312_p7 }
  0x1f   : > { %322 = shalt.err (!%p319_p1)
}
  0x20   : > { %s323_s13 = scalar_lea.vmem %s489_s27, 128  ;;  %s406_s14 = smov [#allocation2]  }
  0x21   : > { %p324_p2 = scmp.ne.s32.totalorder %s489_s27, %s323_s13  ;;  %s328_s16 = sshll.u32 %s406_s14, 4  ;;  %s329_s16 = int_to_ptr.vmem [resolvable:$false] %s328_s16 }
  0x22   : > { %s330_s20 = scalar_lea.vmem %s329_s16, 256  ;;  %p331_p11 = scmp.lt.s32.totalorder %s489_s27, %s329_s16 }
  0x23   : > { %p326_p4 = pnand %p324_p2, %p310_p3  ;;  %p332_p5 = scmp.lt.s32.totalorder %s330_s20, %s323_s13 }
  0x25   : > { %p327_p12 = pneg %p326_p4  ;;  %p333_p8 = por %p332_p5, %p331_p11 }
  0x27   : > { %p334_p9 = pnand %p333_p8, %p327_p12 }
  0x29   : > { %337 = shalt.err (!%p334_p9)
}
  0x2a   : > { %265 = dma.hbm_to_vmem [thread:$0]  (!%p485_p13), %s481_s25, 128, %s489_s27, %s88_s29  }
  0x2b   : > { %p591_p0 = scmp.lt.s32.totalorder %s404_s9, 3  ;;  %p592_p1 = scmp.ge.s32.totalorder %s404_s9, 1 }
  0x2d   : > { %p104_p3 = pnand %p592_p1, %p591_p0 }
  0x2e   : > { %s523_s21 = sand.u32 (!%p104_p3), 1, %s396_s7  }
  0x2f   : > { %107 = sbr.rel (%p104_p3) target bundleno = 118 (0x76), region = 24  ;;  %s252_s22 = sshll.u32 (!%p104_p3), %s523_s21, 3 }
  0x30   : > { %s110_s23 = scalar_lea.sflag (!%p104_p3), [#allocation3], %s523_s21  ;;  %s113_s24 = scalar_lea.vmem (!%p104_p3), [#allocation2], %s252_s22 }
  0x36   : > { %383 = dma.done.wait (%p461_p6), %s110_s23, 128  }
  0x37   : > { %385 = vsyncadd (%p461_p6), %s110_s23, 4294967168  ;;  %v132_v0 = vld [vmem:[%s113_s24] sm:$0xff]  ;;  %s131_s17 = scalar_lea.vmem [#allocation5], %s252_s22  ;;  %s255_s26 = sshll.u32 %s439_s10, 7 }
  0x38   : > { %v137_v1 = vand.u32 2147483647, %v132_v0  ;;  %v133_v4 = vmul.f32 %v132_v0, %v132_v0  ;;  %vm153_vm0 = vcmp.lt.f32.partialorder %v132_v0, 0.0  ;;  %v156_v21 = vmul.f32 0.5, %v132_v0  ;;  %s176_s25 = sshll.u32 %s131_s17, 4  ;;  %s541_s29 = scalar_lea.hbm %s584_s1, %s255_s26  ;;  %s536_s25 = int_to_ptr.vmem [resolvable:$true] %s176_s25 }
  0x39   : > { %s163_s30 = scalar_lea.sflag [#allocation4], %s523_s21  ;;  %s338_s2 = scalar_lea.vmem %s536_s25, 128 }
  0x3a   : > { %v138_v2 = vmul.f32 0.3275911, %v137_v1  ;;  %v134_v5 = vsub.f32 0.0, %v133_v4  ;;  %p339_p6 = scmp.ne.s32.totalorder %s536_s25, %s338_s2  ;;  %p593_p11 = scmp.ne.s32.totalorder %s588_s18, 0 }
  0x3b   : > { %s407_s10 = smov [#allocation5]  }
  0x3c   : > { %v139_v3 = vadd.f32 1.0, %v138_v2  ;;  %v135_v8 = vmul.f32 1.442695, %v134_v5  ;;  %p340_p12 = pnand %p339_p6, %p593_p11  ;;  %s342_s3 = sshll.u32 %s407_s10, 4  ;;  %s343_s3 = int_to_ptr.vmem [resolvable:$false] %s342_s3 }
  0x3d   : > { %s344_s4 = scalar_lea.vmem %s343_s3, 256  ;;  %p345_p7 = scmp.lt.s32.totalorder %s536_s25, %s343_s3 }
  0x3e   : > { %304 = vrcp.f32 %v139_v3  ;;  %p341_p13 = pneg %p340_p12  ;;  %p346_p10 = scmp.lt.s32.totalorder %s344_s4, %s338_s2 }
  0x3f   : > { %306 = vpow2.f32 %v135_v8 }
  0x40   : > { %p347_p2 = por %p346_p10, %p345_p7 }
  0x42   : > { %p348_p4 = pnand %p347_p2, %p341_p13 }
  0x48   : > { %v305_v6 = vpop.eup %304 }
  0x49   : > { %v142_v7 = vmul.f32 1.0614054, %v305_v6  ;;  %v307_v16 = vpop.eup %306 }
  0x4a   : > { %v159_v24 = vmul.f32 0.2820948, %v307_v16 }
  0x4b   : > { %v143_v9 = vadd.f32 -1.4531521, %v142_v7 }
  0x4d   : > { %v144_v10 = vmul.f32 %v305_v6, %v143_v9 }
  0x4f   : > { %v145_v11 = vadd.f32 1.4214138, %v144_v10 }
  0x51   : > { %v146_v12 = vmul.f32 %v305_v6, %v145_v11 }
  0x53   : > { %v147_v13 = vadd.f32 -0.28449672, %v146_v12 }
  0x55   : > { %v148_v14 = vmul.f32 %v305_v6, %v147_v13 }
  0x57   : > { %v149_v15 = vadd.f32 0.2548296, %v148_v14 }
  0x59   : > { %v150_v17 = vmul.f32 %v305_v6, %v149_v15 }
  0x5b   : > { %v151_v18 = vmul.f32 %v307_v16, %v150_v17 }
  0x5d   : > { %v152_v19 = vsub.f32 1.0, %v151_v18 }
  0x5f   : > { %v154_v20 = vsub.f32 0.0, %v152_v19 }
  0x61   : > { %v155_v22 = vsel %vm153_vm0, %v154_v20, %v152_v19 }
  0x62   : > { %v157_v23 = vadd.f32 1.0, %v155_v22 }
  0x64   : > { %v158_v25 = vmul.f32 %v157_v23, %v156_v21 }
  0x66   : > { %v160_v26 = vadd.f32 %v159_v24, %v158_v25 }
  0x68   : > { %161 = vst [vmem:[%s131_s17] sm:$0xff] %v160_v26 }
  0x69   : > { %351 = shalt.err (!%p348_p4)
}
  0x6a   : > { %s352_s5 = scalar_lea.hbm %s541_s29, 128  ;;  %s356_s14 = scalar_lea.hbm %s584_s1, 256 }
  0x6b   : > { %p353_p5 = scmp.ne.s32.totalorder %s541_s29, %s352_s5  ;;  %p357_p0 = scmp.lt.u32.totalorder %s541_s29, %s584_s1 }
  0x6c   : > { %p358_p1 = scmp.lt.u32.totalorder %s356_s14, %s352_s5  ;;  %p360_p6 = scmp.lt.u32.totalorder %s352_s5, %s541_s29 }
  0x6d   : > { %p354_p8 = pnand %p353_p5, %p593_p11 }
  0x6e   : > { %p359_p3 = por %p358_p1, %p357_p0 }
  0x6f   : > { %p355_p9 = pneg %p354_p8 }
  0x70   : > { %p361_p12 = por %p360_p6, %p359_p3 }
  0x72   : > { %p362_p13 = pnand %p361_p12, %p355_p9 }
  0x74   : > { %365 = shalt.err (!%p362_p13)
}
  0x75   : > { %260 = dma.vmem_to_hbm [thread:$0]  (%p593_p11), %s536_s25, 128, %s541_s29, %s163_s30  }
  0x76 PF: > { %s188_s21 = sand.u32 1, %s392_s6   ;;  %p594_p7 = scmp.ne.s32.totalorder %s589_s19, 0 }
  0x77   : > { %p595_p10 = scmp.ge.s32.totalorder %s404_s9, 2  ;;  %s189_s22 = scalar_lea.sflag [#allocation4], %s188_s21 }
  0x79   : > { %p267_p2 = pnand %p595_p10, %p594_p7 }
  0x7b   : > { %387 = dma.done.wait (!%p267_p2), %s189_s22, 128  }
  0x7c   : > { %389 = vsyncadd (!%p267_p2), %s189_s22, 4294967168  ;;  %p14_p4 = scmp.ge.s32.totalorder %s443_s12, 4   ;;  %s596_s6 = smov %s396_s7 }
  0x7d   : > { %s597_s7 = smov %s400_s8  ;;  %s598_s8 = smov %s455_s15 }
  0x7e   : > { %s599_s9 = smov %s443_s12  ;;  %16 = sbr.rel (!%p14_p4) target bundleno = 5 (0x5), region = 69 }
  0x85   :  { %194 = vsyncpa [#allocation3], 1 }
  0x86   :  { %196 = vsyncpa [#allocation3 + $0x1], 1 }
  0x87   :  { %197 = vsyncpa [#allocation4], 1 }
  0x88   :  { %199 = vsyncpa [#allocation4 + $0x1], 1 }

</bundles_post_ra>
